<compile_context>
chip_gen: v7x
topology: tpu7x:2x2x1
jax: 0.10.0
libtpu: 0.0.40
codegen_flags: <defaults>
</compile_context>

<pallas_src>
import functools

import jax
import jax.numpy as jnp
from jax.experimental import pallas as pl
from jax.experimental.pallas import tpu as pltpu


def _round_up(x: int, m: int) -> int:
    return ((x + m - 1) // m) * m


def _ceil_div(a: int, b: int) -> int:
    return -(-a // b)


def _vmem_capacity_bytes() -> int:
    try:
        cap = getattr(pltpu.get_tpu_info(), "vmem_capacity_bytes", None)
        if cap:
            return int(cap)
    except Exception:
        pass
    return 64 << 20  # conservative fallback: v7x per-TensorCore VMEM


def compose_kernel(x_ref, w1_ref, b1_ref, w2_ref, b2_ref, o_ref):
    # first(x): x @ W1 on the MXU with f32 accumulation, bias add on the VPU.
    h = jnp.dot(x_ref[...], w1_ref[...], preferred_element_type=jnp.float32)
    # Keep the intermediate as a value: bias-add in f32, single cast to the MXU compute
    # dtype. No f32 VMEM scratch round-trip (saves a full vst+vld pass per grid step).
    h = (h + b1_ref[...]).astype(w2_ref.dtype)
    # second(first(x)): h @ W2 + b2, f32 accumulation.
    y = jnp.dot(h, w2_ref[...], preferred_element_type=jnp.float32)
    o_ref[...] = (y + b2_ref[...]).astype(o_ref.dtype)


@functools.lru_cache(maxsize=None)
def _build_compose_call(N_p, F_in_p, F_mid_p, F_out_pad, tile_n, tile_f,
                        compute_dtype_name, out_dtype_name, single_buffer_weights):
    cdt = jnp.dtype(compute_dtype_name)
    odt = jnp.dtype(out_dtype_name)
    cb, ob = cdt.itemsize, odt.itemsize
    n_row = N_p // tile_n
    n_col = F_out_pad // tile_f
    nbuf_w = 1 if single_buffer_weights else 2
    res_kw = {"pipeline_mode": pl.Buffered(1)} if single_buffer_weights else {}

    # Exact VMEM working set (no fudge factor): x / out tiles double-buffered,
    # weights single- (or fallback double-) buffered, no scratch.
    vmem_needed = (
        2 * tile_n * F_in_p * cb
        + nbuf_w * (F_in_p * F_mid_p * cb + F_mid_p * 4)
        + nbuf_w * (F_mid_p * tile_f * cb + tile_f * 4)
        + 2 * tile_n * tile_f * ob
    )
    vmem_cap = _vmem_capacity_bytes()
    ceiling = max(vmem_cap - (4 << 20), 16 << 20)       # leave compiler-scratch headroom
    vmem_limit = min(max(int(vmem_needed) + (4 << 20), 32 << 20), ceiling)

    cost = pl.CostEstimate(
        flops=2 * N_p * F_in_p * F_mid_p * n_col + 2 * N_p * F_mid_p * F_out_pad,
        transcendentals=0,
        bytes_accessed=(n_col * N_p * F_in_p * cb
                        + F_in_p * F_mid_p * cb + F_mid_p * F_out_pad * cb
                        + (F_mid_p + F_out_pad) * 4
                        + N_p * F_out_pad * ob),
    )

    grid_spec = pltpu.PrefetchScalarGridSpec(
        num_scalar_prefetch=0,
        # Output-feature (column) axis OUTER: each W2 tile is DMA'd once total, and when
        # W2 dominates residency, megacore sharding of the outer axis splits W2 across
        # the two v7x TensorCores instead of duplicating it per core.
        grid=(n_col, n_row),
        in_specs=[
            pl.BlockSpec((tile_n, F_in_p), lambda j, i: (i, 0)),            # x tile
            pl.BlockSpec((F_in_p, F_mid_p), lambda j, i: (0, 0), **res_kw),  # W1 (resident)
            pl.BlockSpec((1, F_mid_p), lambda j, i: (0, 0), **res_kw),       # b1
            pl.BlockSpec((F_mid_p, tile_f), lambda j, i: (0, j), **res_kw),  # W2 col tile
            pl.BlockSpec((1, tile_f), lambda j, i: (0, j), **res_kw),        # b2 col tile
        ],
        out_specs=pl.BlockSpec((tile_n, tile_f), lambda j, i: (i, j)),
    )

    return pl.pallas_call(
        compose_kernel,
        out_shape=jax.ShapeDtypeStruct((N_p, F_out_pad), odt),
        grid_spec=grid_spec,
        compiler_params=pltpu.CompilerParams(
            dimension_semantics=("parallel", "parallel"),
            vmem_limit_bytes=int(vmem_limit),
        ),
        cost_estimate=cost,
    )


def make_compose(w1, b1, w2, b2, *, tile_n=None,
                 compute_dtype=jnp.bfloat16, out_dtype=None):
    """Builds a fused forward for Compose(Linear(F_in->F_mid), Linear(F_mid->F_out)).

    Parameters are padded to lane-dense (128) shapes and cast to the compute dtype ONCE
    here; the returned forward only touches the activation per call.
    """
    cdt = jnp.dtype(compute_dtype)
    cb = cdt.itemsize

    F_in, F_mid = w1.shape
    F_out = w2.shape[1]
    b1 = jnp.asarray(b1, jnp.float32).reshape(1, -1)
    b2 = jnp.asarray(b2, jnp.float32).reshape(1, -1)

    # Feature axes -> multiples of 128 (lane-dense MXU pushes, unmasked output vst).
    F_in_p = _round_up(F_in, 128)
    F_mid_p = _round_up(F_mid, 128)
    F_out_p = _round_up(F_out, 128)

    vmem_cap = _vmem_capacity_bytes()
    budget = max(vmem_cap - (8 << 20), 16 << 20)
    # Larger row tiles on 128 MiB parts (v5e/v6e); 256 on 64 MiB v7x.
    tile_n_req = int(tile_n) if tile_n is not None else (512 if vmem_cap >= (96 << 20) else 256)
    ob_assumed = jnp.dtype(out_dtype).itemsize if out_dtype is not None else 4

    def working_set(tn, tf):
        return (2 * tn * F_in_p * cb                       # x tile (double-buffered)
                + F_in_p * F_mid_p * cb + F_mid_p * 4      # W1 + b1 (single-buffered)
                + F_mid_p * tf * cb + tf * 4               # W2 tile + b2 tile
                + 2 * tn * tf * ob_assumed)                # output tile (double-buffered)

    # Plan the output-feature tiling so the resident working set fits this generation's VMEM.
    n_col, tile_f = 1, F_out_p
    while working_set(tile_n_req, tile_f) > budget and tile_f > 128:
        n_col += 1
        tile_f = _round_up(_ceil_div(F_out_p, n_col), 128)
    while working_set(tile_n_req, tile_f) > budget and tile_n_req > 16:
        tile_n_req = max(16, _round_up(tile_n_req // 2, 16))
    F_out_pad = n_col * tile_f   # pad W2/out so column tiles divide exactly (no partial blocks)

    # Pad + cast parameters once (hoisted out of the per-call hot path).
    w1_p = jnp.zeros((F_in_p, F_mid_p), cdt).at[:F_in, :F_mid].set(w1.astype(cdt))
    w2_p = jnp.zeros((F_mid_p, F_out_pad), cdt).at[:F_mid, :F_out].set(w2.astype(cdt))
    b1_p = jnp.zeros((1, F_mid_p), jnp.float32).at[:, :F_mid].set(b1)
    b2_p = jnp.zeros((1, F_out_pad), jnp.float32).at[:, :F_out].set(b2)

    def forward(x):
        N, fin = x.shape
        assert fin == F_in, f"expected {F_in} input features, got {fin}"
        odt = jnp.dtype(out_dtype) if out_dtype is not None else x.dtype

        # Row tile: clamp to the 16-row bf16 sublane pack and balance tiles so padding
        # waste is at most one sublane group per tile (N=8 pads to 16, not 128).
        tn = max(16, min(tile_n_req, _round_up(N, 16)))
        n_row = _ceil_div(N, tn)
        tn = _round_up(_ceil_div(N, n_row), 16)
        N_p = n_row * tn

        # Pad/cast the activation only when actually misaligned.
        if x.shape == (N_p, F_in_p) and x.dtype == cdt:
            x_p = x
        else:
            x_p = jnp.zeros((N_p, F_in_p), cdt).at[:N, :F_in].set(x.astype(cdt))

        args = (x_p, w1_p, b1_p, w2_p, b2_p)
        try:
            call = _build_compose_call(N_p, F_in_p, F_mid_p, F_out_pad, tn, tile_f,
                                       cdt.name, odt.name, True)
            out_p = call(*args)
        except Exception:
            # Fallback: default double-buffered weight pipelining (always-compilable path).
            call = _build_compose_call(N_p, F_in_p, F_mid_p, F_out_pad, tn, tile_f,
                                       cdt.name, odt.name, False)
            out_p = call(*args)
        return out_p[:N, :F_out]

    return forward


def compose_forward(x, w1, b1, w2, b2, **kwargs):
    return make_compose(w1, b1, w2, b2, **kwargs)(x)


def compose_reference(x, w1, b1, w2, b2, compute_dtype=jnp.bfloat16):
    # Same dtype path as the kernel: bf16 operands, f32 accumulation, f32 biases.
    cd = compute_dtype
    b1 = jnp.asarray(b1, jnp.float32).reshape(1, -1)
    b2 = jnp.asarray(b2, jnp.float32).reshape(1, -1)
    h = jnp.dot(x.astype(cd), w1.astype(cd), preferred_element_type=jnp.float32) + b1
    y = jnp.dot(h.astype(cd), w2.astype(cd), preferred_element_type=jnp.float32) + b2
    return y


def compose_reference_f32(x, w1, b1, w2, b2):
    h = x @ w1 + b1          # first
    return h @ w2 + b2       # second(first(x))


if __name__ == "__main__":
    key = jax.random.PRNGKey(0)
    k_x, k_w1, k_b1, k_w2, k_b2 = jax.random.split(key, 5)

    N, F_in, F_mid, F_out = 8, 32, 64, 32  # seq=8, hidden 32 -> 64 -> 32

    x = jax.random.normal(k_x, (N, F_in), dtype=jnp.float32)
    # Deterministic parameter init (synthetic — shapes implied by the two Linear submodules).
    w1 = jax.random.normal(k_w1, (F_in, F_mid), dtype=jnp.float32) * 0.1
    b1 = jax.random.normal(k_b1, (1, F_mid), dtype=jnp.float32) * 0.1
    w2 = jax.random.normal(k_w2, (F_mid, F_out), dtype=jnp.float32) * 0.1
    b2 = jax.random.normal(k_b2, (1, F_out), dtype=jnp.float32) * 0.1

    forward = make_compose(w1, b1, w2, b2)   # weights padded/cast once, reused per call
    out = jax.block_until_ready(forward(x))
    assert out.shape == (N, F_out)
    assert out.dtype == x.dtype

    # Tight check against a reference using the identical bf16-operand / f32-accumulate path.
    ref_bf16 = compose_reference(x, w1, b1, w2, b2)
    assert jnp.allclose(out, ref_bf16, atol=1e-3, rtol=1e-3)

    # Loose check against the pure-f32 module semantics (bf16 operand rounding only).
    ref_f32 = compose_reference_f32(x, w1, b1, w2, b2)
    assert jnp.allclose(out, ref_f32, atol=5e-2, rtol=5e-2)

    print("KERNEL_OK")
</pallas_src>

<mosaic_0001>
module attributes {stable_mosaic.version = 11 : i64} {
  func.func @compose_kernel(%arg0: i32, %arg1: i32, %arg2: memref<16x128xbf16, #tpu.memory_space<vmem>>, %arg3: memref<128x128xbf16, #tpu.memory_space<vmem>>, %arg4: memref<1x128xf32, #tpu.memory_space<vmem>>, %arg5: memref<128x128xbf16, #tpu.memory_space<vmem>>, %arg6: memref<1x128xf32, #tpu.memory_space<vmem>>, %arg7: memref<16x128xf32, #tpu.memory_space<vmem>>) attributes {dimension_semantics = [#tpu.dimension_semantics<parallel>, #tpu.dimension_semantics<parallel>], iteration_bounds = array<i64: 1, 1>, scalar_prefetch = 0 : i64, scratch_operands = 0 : i64, tpu.core_type = #tpu.core_type<tc>, window_params = [{transform_indices = @transform_0, window_bounds = array<i64: 16, 128>}, {pipeline_mode = #tpu.pipeline_mode<synchronous>, transform_indices = @transform_1, window_bounds = array<i64: 128, 128>}, {pipeline_mode = #tpu.pipeline_mode<synchronous>, transform_indices = @transform_2, window_bounds = array<i64: 1, 128>}, {pipeline_mode = #tpu.pipeline_mode<synchronous>, transform_indices = @transform_3, window_bounds = array<i64: 128, 128>}, {pipeline_mode = #tpu.pipeline_mode<synchronous>, transform_indices = @transform_4, window_bounds = array<i64: 1, 128>}, {transform_indices = @transform_5, window_bounds = array<i64: 16, 128>}]} {
    %c0 = arith.constant 0 : index
    %c0_0 = arith.constant 0 : index
    %0 = vector.load %arg2[%c0, %c0_0] : memref<16x128xbf16, #tpu.memory_space<vmem>>, vector<16x128xbf16>
    %c0_1 = arith.constant 0 : index
    %c0_2 = arith.constant 0 : index
    %1 = vector.load %arg3[%c0_1, %c0_2] : memref<128x128xbf16, #tpu.memory_space<vmem>>, vector<128x128xbf16>
    %cst = arith.constant dense<0.000000e+00> : vector<16x128xf32>
    %2 = tpu.matmul %0, %1, %cst {dimension_numbers = #tpu.dot_dimension_numbers<[1], [0], [0], [1], [0, 0, 1, 1], [], []>} : vector<16x128xbf16>, vector<128x128xbf16>, vector<16x128xf32> -> vector<16x128xf32>
    %c0_3 = arith.constant 0 : index
    %c0_4 = arith.constant 0 : index
    %3 = vector.load %arg4[%c0_3, %c0_4] : memref<1x128xf32, #tpu.memory_space<vmem>>, vector<1x128xf32>
    %4 = vector.broadcast %3 : vector<1x128xf32> to vector<16x128xf32>
    %5 = arith.addf %2, %4 : vector<16x128xf32>
    %6 = arith.truncf %5 : vector<16x128xf32> to vector<16x128xbf16>
    %c0_5 = arith.constant 0 : index
    %c0_6 = arith.constant 0 : index
    %7 = vector.load %arg5[%c0_5, %c0_6] : memref<128x128xbf16, #tpu.memory_space<vmem>>, vector<128x128xbf16>
    %cst_7 = arith.constant dense<0.000000e+00> : vector<16x128xf32>
    %8 = tpu.matmul %6, %7, %cst_7 {dimension_numbers = #tpu.dot_dimension_numbers<[1], [0], [0], [1], [0, 0, 1, 1], [], []>} : vector<16x128xbf16>, vector<128x128xbf16>, vector<16x128xf32> -> vector<16x128xf32>
    %c0_8 = arith.constant 0 : index
    %c0_9 = arith.constant 0 : index
    %9 = vector.load %arg6[%c0_8, %c0_9] : memref<1x128xf32, #tpu.memory_space<vmem>>, vector<1x128xf32>
    %10 = vector.broadcast %9 : vector<1x128xf32> to vector<16x128xf32>
    %11 = arith.addf %8, %10 : vector<16x128xf32>
    %c0_10 = arith.constant 0 : index
    %c0_11 = arith.constant 0 : index
    %12 = vector.load %arg7[%c0_10, %c0_11] : memref<16x128xf32, #tpu.memory_space<vmem>>, vector<16x128xf32>
    tpu.vector_store %arg7[%c0_10, %c0_11], %11 {strides = array<i32>} : memref<16x128xf32, #tpu.memory_space<vmem>>, vector<16x128xf32>,
    return
  }
  func.func @transform_0(%arg0: i32, %arg1: i32) -> (i32, i32) {
    %c0_i32 = arith.constant 0 : i32
    %c0_i32_0 = arith.constant 0 : i32
    return %arg1, %c0_i32 : i32, i32
  }
  func.func @transform_1(%arg0: i32, %arg1: i32) -> (i32, i32) {
    %c0_i32 = arith.constant 0 : i32
    %c0_i32_0 = arith.constant 0 : i32
    %c0_i32_1 = arith.constant 0 : i32
    return %c0_i32, %c0_i32_0 : i32, i32
  }
  func.func @transform_2(%arg0: i32, %arg1: i32) -> (i32, i32) {
    %c0_i32 = arith.constant 0 : i32
    %c0_i32_0 = arith.constant 0 : i32
    %c0_i32_1 = arith.constant 0 : i32
    return %c0_i32, %c0_i32_0 : i32, i32
  }
  func.func @transform_3(%arg0: i32, %arg1: i32) -> (i32, i32) {
    %c0_i32 = arith.constant 0 : i32
    %c0_i32_0 = arith.constant 0 : i32
    return %c0_i32, %arg0 : i32, i32
  }
  func.func @transform_4(%arg0: i32, %arg1: i32) -> (i32, i32) {
    %c0_i32 = arith.constant 0 : i32
    %c0_i32_0 = arith.constant 0 : i32
    return %c0_i32, %arg0 : i32, i32
  }
  func.func @transform_5(%arg0: i32, %arg1: i32) -> (i32, i32) {
    %c0_i32 = arith.constant 0 : i32
    return %arg1, %arg0 : i32, i32
  }
}

module attributes {stable_mosaic.version = 11 : i64} {
  func.func @compose_kernel(%arg0: i32, %arg1: i32, %arg2: memref<16x128xbf16, #tpu.memory_space<vmem>>, %arg3: memref<128x128xbf16, #tpu.memory_space<vmem>>, %arg4: memref<1x128xf32, #tpu.memory_space<vmem>>, %arg5: memref<128x128xbf16, #tpu.memory_space<vmem>>, %arg6: memref<1x128xf32, #tpu.memory_space<vmem>>, %arg7: memref<16x128xf32, #tpu.memory_space<vmem>>) attributes {dimension_semantics = [#tpu.dimension_semantics<parallel>, #tpu.dimension_semantics<parallel>], iteration_bounds = array<i64: 1, 1>, scalar_prefetch = 0 : i64, scratch_operands = 0 : i64, tpu.core_type = #tpu.core_type<tc>, window_params = [{transform_indices = @transform_0, window_bounds = array<i64: 16, 128>}, {pipeline_mode = #tpu.pipeline_mode<synchronous>, transform_indices = @transform_1, window_bounds = array<i64: 128, 128>}, {pipeline_mode = #tpu.pipeline_mode<synchronous>, transform_indices = @transform_2, window_bounds = array<i64: 1, 128>}, {transform_indices = @transform_3, window_bounds = array<i64: 128, 128>}, {transform_indices = @transform_4, window_bounds = array<i64: 1, 128>}, {transform_indices = @transform_5, window_bounds = array<i64: 16, 128>}]} {
    %c0 = arith.constant 0 : index
    %c0_0 = arith.constant 0 : index
    %0 = vector.load %arg2[%c0, %c0_0] : memref<16x128xbf16, #tpu.memory_space<vmem>>, vector<16x128xbf16>
    %c0_1 = arith.constant 0 : index
    %c0_2 = arith.constant 0 : index
    %1 = vector.load %arg3[%c0_1, %c0_2] : memref<128x128xbf16, #tpu.memory_space<vmem>>, vector<128x128xbf16>
    %cst = arith.constant dense<0.000000e+00> : vector<16x128xf32>
    %2 = tpu.matmul %0, %1, %cst {dimension_numbers = #tpu.dot_dimension_numbers<[1], [0], [0], [1], [0, 0, 1, 1], [], []>} : vector<16x128xbf16>, vector<128x128xbf16>, vector<16x128xf32> -> vector<16x128xf32>
    %c0_3 = arith.constant 0 : index
    %c0_4 = arith.constant 0 : index
    %3 = vector.load %arg4[%c0_3, %c0_4] : memref<1x128xf32, #tpu.memory_space<vmem>>, vector<1x128xf32>
    %4 = vector.broadcast %3 : vector<1x128xf32> to vector<16x128xf32>
    %5 = arith.addf %2, %4 : vector<16x128xf32>
    %6 = arith.truncf %5 : vector<16x128xf32> to vector<16x128xbf16>
    %c0_5 = arith.constant 0 : index
    %c0_6 = arith.constant 0 : index
    %7 = vector.load %arg5[%c0_5, %c0_6] : memref<128x128xbf16, #tpu.memory_space<vmem>>, vector<128x128xbf16>
    %cst_7 = arith.constant dense<0.000000e+00> : vector<16x128xf32>
    %8 = tpu.matmul %6, %7, %cst_7 {dimension_numbers = #tpu.dot_dimension_numbers<[1], [0], [0], [1], [0, 0, 1, 1], [], []>} : vector<16x128xbf16>, vector<128x128xbf16>, vector<16x128xf32> -> vector<16x128xf32>
    %c0_8 = arith.constant 0 : index
    %c0_9 = arith.constant 0 : index
    %9 = vector.load %arg6[%c0_8, %c0_9] : memref<1x128xf32, #tpu.memory_space<vmem>>, vector<1x128xf32>
    %10 = vector.broadcast %9 : vector<1x128xf32> to vector<16x128xf32>
    %11 = arith.addf %8, %10 : vector<16x128xf32>
    %c0_10 = arith.constant 0 : index
    %c0_11 = arith.constant 0 : index
    %12 = vector.load %arg7[%c0_10, %c0_11] : memref<16x128xf32, #tpu.memory_space<vmem>>, vector<16x128xf32>
    tpu.vector_store %arg7[%c0_10, %c0_11], %11 {strides = array<i32>} : memref<16x128xf32, #tpu.memory_space<vmem>>, vector<16x128xf32>,
    return
  }
  func.func @transform_0(%arg0: i32, %arg1: i32) -> (i32, i32) {
    %c0_i32 = arith.constant 0 : i32
    %c0_i32_0 = arith.constant 0 : i32
    return %arg1, %c0_i32 : i32, i32
  }
  func.func @transform_1(%arg0: i32, %arg1: i32) -> (i32, i32) {
    %c0_i32 = arith.constant 0 : i32
    %c0_i32_0 = arith.constant 0 : i32
    %c0_i32_1 = arith.constant 0 : i32
    return %c0_i32, %c0_i32_0 : i32, i32
  }
  func.func @transform_2(%arg0: i32, %arg1: i32) -> (i32, i32) {
    %c0_i32 = arith.constant 0 : i32
    %c0_i32_0 = arith.constant 0 : i32
    %c0_i32_1 = arith.constant 0 : i32
    return %c0_i32, %c0_i32_0 : i32, i32
  }
  func.func @transform_3(%arg0: i32, %arg1: i32) -> (i32, i32) {
    %c0_i32 = arith.constant 0 : i32
    %c0_i32_0 = arith.constant 0 : i32
    return %c0_i32, %arg0 : i32, i32
  }
  func.func @transform_4(%arg0: i32, %arg1: i32) -> (i32, i32) {
    %c0_i32 = arith.constant 0 : i32
    %c0_i32_0 = arith.constant 0 : i32
    return %c0_i32, %arg0 : i32, i32
  }
  func.func @transform_5(%arg0: i32, %arg1: i32) -> (i32, i32) {
    %c0_i32 = arith.constant 0 : i32
    return %arg1, %arg0 : i32, i32
  }
}

</mosaic_0001>

<bundles_post_ra>
// kernel: tpu_custom_call.1
= control target key start
LH: loop header
LB: loop body
LE: loop exit
PB: predicated region body
PF: predicated region fallthrough
CT: control target
= control target key end

     0   :  { %10 = vsyncpa [#allocation3], 0  ;;  %s624_s0 = inlined_call_operand.hbm [shape: bf16[16,128], index: 0, kind: input, shape index: {}]   ;;  %s625_s1 = inlined_call_operand.hbm [shape: bf16[128,128], index: 1, kind: input, shape index: {}]   ;;  %s626_s2 = inlined_call_operand.vmem [shape: f32[1,128], index: 2, kind: input, shape index: {}]   ;;  %s627_s3 = inlined_call_operand.hbm [shape: bf16[128,128], index: 3, kind: input, shape index: {}]   ;;  %s628_s4 = inlined_call_operand.vmem [shape: f32[1,128], index: 4, kind: input, shape index: {}]   ;;  %s629_s5 = inlined_call_operand.hbm [shape: f32[16,128], index: 5, kind: output, shape index: {}]  }
   0x1   :  { %11 = vsyncpa [#allocation6], 0 }
   0x2   :  { %12 = vsyncpa [#allocation4], 0  ;;  %s514_s18 = smov [#allocation5]   ;;  %s515_s20 = smov [#allocation2]  }
   0x3   :  { %s30_s19 = sshll.u32 %s514_s18, 4  ;;  %s18_s21 = sshll.u32 %s515_s20, 4  ;;  %s31_s19 = int_to_ptr.vmem [resolvable:$true] %s30_s19  ;;  %s554_s21 = int_to_ptr.vmem [resolvable:$true] %s18_s21 }
   0x4   :  { %s420_s24 = scalar_lea.hbm %s625_s1, 1024 }
   0x5   :  { %p421_p0 = scmp.ne.s32.totalorder %s625_s1, %s420_s24  ;;  %p424_p1 = scmp.lt.u32.totalorder %s420_s24, %s625_s1 }
   0x7   :  { %p426_p2 = pnand %p424_p1, %p421_p0 }
   0x9   :  { %429 = shalt.err (!%p426_p2)
}
   0xa   :  { %s430_s29 = scalar_lea.vmem %s31_s19, 1024  ;;  %p435_p4 = scmp.lt.s32.totalorder %s31_s19, %s31_s19 }
   0xb   :  { %p431_p3 = scmp.ne.s32.totalorder %s31_s19, %s430_s29  ;;  %p436_p5 = scmp.lt.s32.totalorder %s430_s29, %s430_s29 }
   0xd   :  { %p437_p6 = por %p436_p5, %p435_p4 }
   0xf   :  { %p438_p7 = pnand %p437_p6, %p431_p3 }
  0x11   :  { %441 = shalt.err (!%p438_p7)
}
  0x12   :  { %s516_s30 = smov 64   ;;  %s517_s6 = smov 4  }
  0x13   :  { %36 = dma.hbm_to_vmem [thread:$0]  %s625_s1, 1024, %s31_s19, [#allocation6], %s516_s30, %s516_s30, %s517_s6  }
  0x14   :  { %s442_s11 = scalar_lea.hbm %s624_s0, 128 }
  0x15   :  { %p443_p8 = scmp.ne.s32.totalorder %s624_s0, %s442_s11  ;;  %p446_p9 = scmp.lt.u32.totalorder %s442_s11, %s624_s0 }
  0x17   :  { %p448_p10 = pnand %p446_p9, %p443_p8 }
  0x19   :  { %451 = shalt.err (!%p448_p10)
}
  0x1a   :  { %s452_s16 = scalar_lea.vmem %s554_s21, 128  ;;  %p457_p12 = scmp.lt.s32.totalorder %s554_s21, %s554_s21 }
  0x1b   :  { %p453_p11 = scmp.ne.s32.totalorder %s554_s21, %s452_s16  ;;  %p458_p13 = scmp.lt.s32.totalorder %s452_s16, %s452_s16 }
  0x1d   :  { %p459_p0 = por %p458_p13, %p457_p12 }
  0x1f   :  { %p460_p1 = pnand %p459_p0, %p453_p11 }
  0x21   :  { %463 = shalt.err (!%p460_p1)
}
  0x22   :  { %24 = dma.hbm_to_vmem [thread:$0]  %s624_s0, 128, %s554_s21, [#allocation3], %s516_s30, %s516_s30, %s517_s6  }
  0x23   :  { %s518_s18 = smov [#allocation7]   ;;  %s464_s23 = scalar_lea.hbm %s627_s3, 1024 }
  0x24   :  { %s44_s19 = sshll.u32 %s518_s18, 4  ;;  %p465_p2 = scmp.ne.s32.totalorder %s627_s3, %s464_s23  ;;  %s45_s19 = int_to_ptr.vmem [resolvable:$true] %s44_s19 }
  0x25   :  { %p468_p3 = scmp.lt.u32.totalorder %s464_s23, %s627_s3 }
  0x27   :  { %p470_p4 = pnand %p468_p3, %p465_p2 }
  0x29   :  { %473 = shalt.err (!%p470_p4)
}
  0x2a   :  { %s474_s28 = scalar_lea.vmem %s45_s19, 1024  ;;  %p479_p6 = scmp.lt.s32.totalorder %s45_s19, %s45_s19 }
  0x2b   :  { %p475_p5 = scmp.ne.s32.totalorder %s45_s19, %s474_s28  ;;  %p480_p7 = scmp.lt.s32.totalorder %s474_s28, %s474_s28 }
  0x2d   :  { %p481_p8 = por %p480_p7, %p479_p6 }
  0x2f   :  { %p482_p9 = pnand %p481_p8, %p475_p5 }
  0x31   :  { %485 = shalt.err (!%p482_p9)
}
  0x32   :  { %50 = dma.hbm_to_vmem [thread:$0]  %s627_s3, 1024, %s45_s19, [#allocation6], %s516_s30, %s516_s30, %s517_s6  }
  0x33   :  { %508 = dma.done.wait [#allocation3], 128  }
  0x34   :  { %509 = vsyncadd [#allocation3], 4294967168 }
  0x35   :  { %510 = dma.done.wait [#allocation6], 2048  }
  0x36   :  { %511 = vsyncadd [#allocation6], 4294965248  ;;  %v519_v0 = vmov 0.0   ;;  %vm520_vm0 = vmmov 0   ;;  %v403_v1 = vld [vmem:[#allocation5] sm:$0xff]   ;;  %v404_v2 = vld [vmem:[#allocation5 + $0x8] sm:$0xff]  }
  0x37   :  { %353 = vmatprep.subr.bf16.mxu0 %v519_v0  ;;  %369 = vmatprep.mubr.msk.bf16.mxu0 %vm520_vm0, %v519_v0  ;;  %v405_v3 = vld [vmem:[#allocation5 + $0x10] sm:$0xff]   ;;  %v412_v4 = vld [vmem:[#allocation7] sm:$0xff]   ;;  %v406_v5 = vld [vmem:[#allocation5 + $0x18] sm:$0xff]   ;;  %s521_s7 = smov [#allocation8]  }
  0x38   :  { %373 = vmatprep.subr.bf16.mxu1 %v519_v0  ;;  %389 = vmatprep.mubr.msk.bf16.mxu1 %vm520_vm0, %v519_v0  ;;  %v413_v6 = vld [vmem:[#allocation7 + $0x8] sm:$0xff]   ;;  %v407_v7 = vld [vmem:[#allocation5 + $0x20] sm:$0xff]   ;;  %v414_v8 = vld [vmem:[#allocation7 + $0x10] sm:$0xff]   ;;  %s303_s8 = sshll.u32 %s521_s7, 4  ;;  %s304_s8 = int_to_ptr.vmem [resolvable:$true] %s303_s8 }
  0x39   :  { %354 = vmatpush3.bf16.msra.mxu0 %v403_v1  ;;  %374 = vmatpush3.bf16.msra.mxu1 %v412_v4  ;;  %v408_v9 = vld [vmem:[#allocation5 + $0x28] sm:$0xff]   ;;  %v415_v10 = vld [vmem:[#allocation7 + $0x18] sm:$0xff]   ;;  %v409_v11 = vld [vmem:[#allocation5 + $0x30] sm:$0xff]   ;;  %p491_p11 = scmp.lt.s32.totalorder %s304_s8, %s304_s8 }
  0x3a   :  { %355 = vmatprep.subr.bf16.mxu0 %v519_v0  ;;  %375 = vmatprep.subr.bf16.mxu1 %v519_v0  ;;  %v416_v12 = vld [vmem:[#allocation7 + $0x20] sm:$0xff]   ;;  %v410_v13 = vld [vmem:[#allocation5 + $0x38] sm:$0xff]   ;;  %v417_v14 = vld [vmem:[#allocation7 + $0x28] sm:$0xff]  }
  0x3b   :  { %v411_v15 = vld [vmem:[#allocation2] sm:$0xff]   ;;  %v418_v16 = vld [vmem:[#allocation7 + $0x30] sm:$0xff]  }
  0x3c   :  { %v419_v17 = vld [vmem:[#allocation7 + $0x38] sm:$0xff]  }
  0x3d   :  { %356 = vmatpush3.bf16.msra.mxu0 %v404_v2  ;;  %376 = vmatpush3.bf16.msra.mxu1 %v413_v6  ;;  %v316_v18 = vld [vmem:[%s626_s2] ss:$0 sm:$0xff]  ;;  %s486_s2 = scalar_lea.vmem %s304_s8, 256 }
  0x3e   :  { %357 = vmatprep.subr.bf16.mxu0 %v519_v0  ;;  %377 = vmatprep.subr.bf16.mxu1 %v519_v0  ;;  %v326_v26 = vld [vmem:[%s628_s4] ss:$0 sm:$0xff]  ;;  %p487_p10 = scmp.ne.s32.totalorder %s304_s8, %s486_s2  ;;  %p492_p12 = scmp.lt.s32.totalorder %s486_s2, %s486_s2 }
  0x40   :  { %p493_p13 = por %p492_p12, %p491_p11 }
  0x41   :  { %358 = vmatpush3.bf16.msra.mxu0 %v405_v3  ;;  %378 = vmatpush3.bf16.msra.mxu1 %v414_v8 }
  0x42   :  { %359 = vmatprep.subr.bf16.mxu0 %v519_v0  ;;  %379 = vmatprep.subr.bf16.mxu1 %v519_v0  ;;  %p494_p0 = pnand %p493_p13, %p487_p10 }
  0x45   :  { %360 = vmatpush3.bf16.msra.mxu0 %v406_v5  ;;  %380 = vmatpush3.bf16.msra.mxu1 %v415_v10 }
  0x46   :  { %361 = vmatprep.subr.bf16.mxu0 %v519_v0  ;;  %381 = vmatprep.subr.bf16.mxu1 %v519_v0 }
  0x49   :  { %362 = vmatpush3.bf16.msra.mxu0 %v407_v7  ;;  %382 = vmatpush3.bf16.msra.mxu1 %v416_v12 }
  0x4a   :  { %363 = vmatprep.subr.bf16.mxu0 %v519_v0  ;;  %383 = vmatprep.subr.bf16.mxu1 %v519_v0 }
  0x4d   :  { %364 = vmatpush3.bf16.msra.mxu0 %v408_v9  ;;  %384 = vmatpush3.bf16.msra.mxu1 %v417_v14 }
  0x4e   :  { %365 = vmatprep.subr.bf16.mxu0 %v519_v0  ;;  %385 = vmatprep.subr.bf16.mxu1 %v519_v0 }
  0x51   :  { %366 = vmatpush3.bf16.msra.mxu0 %v409_v11  ;;  %386 = vmatpush3.bf16.msra.mxu1 %v418_v16 }
  0x52   :  { %367 = vmatprep.subr.bf16.mxu0 %v519_v0  ;;  %387 = vmatprep.subr.bf16.mxu1 %v519_v0 }
  0x55   :  { %368 = vmatpush3.bf16.msra.mxu0 %v410_v13  ;;  %388 = vmatpush3.bf16.msra.mxu1 %v419_v17 }
  0x58   :  { %370 = vmatmul.mubr.bf16.vlgmr.msra.gmra.mrb[0].mxu0 %v411_v15 }
 0x12b   :  { %v176_v19 = vpop.f32.mrb[0].mxu0 }
 0x12c   :  { %v371_v20 = vpop.f32.mrb[1].mxu0  ;;  %v177_v22 = vadd.f32 %v316_v18, %v176_v19 }
 0x12d   :  { %v179_v21 = vpop.f32.mrb[2].mxu0 }
 0x12e   :  { %v180_v23 = vadd.f32 %v316_v18, %v179_v21  ;;  %v372_v24 = vpop.f32.mrb[3].mxu0 }
 0x130   :  { %v183_v25 = vpack.c.bf16 %v180_v23, %v177_v22 }
 0x132   :  { %390 = vmatmul.mubr.bf16.vlgmr.msra.gmra.mrb[0].mxu1 %v183_v25 }
 0x205   :  { %v289_v27 = vpop.f32.mrb[0].mxu1 }
 0x206   :  { %v290_v28 = vadd.f32 %v326_v26, %v289_v27  ;;  %v391_v29 = vpop.f32.mrb[1].mxu1 }
 0x207   :  { %v292_v30 = vpop.f32.mrb[2].mxu1 }
 0x208   :  { %296 = vst [vmem:[#allocation8] sm:$0xff] %v290_v28  ;;  %v293_v31 = vadd.f32 %v326_v26, %v292_v30  ;;  %v392_v32 = vpop.f32.mrb[3].mxu1 }
 0x20a   :  { %297 = vst [vmem:[#allocation8 + $0x8] sm:$0xff] %v293_v31 }
 0x20b   :  { %497 = shalt.err (!%p494_p0)
}
 0x20c   :  { %s498_s10 = scalar_lea.hbm %s629_s5, 256 }
 0x20d   :  { %p499_p1 = scmp.ne.s32.totalorder %s629_s5, %s498_s10  ;;  %p502_p2 = scmp.lt.u32.totalorder %s498_s10, %s629_s5 }
 0x20f   :  { %p504_p3 = pnand %p502_p2, %p499_p1 }
 0x211   :  { %507 = shalt.err (!%p504_p3)
}
 0x212   :  { %s522_s15 = smov 128   ;;  %s523_s16 = smov 8  }
 0x213   :  { %309 = dma.vmem_to_hbm [thread:$0]  %s304_s8, 256, %s629_s5, [#allocation4], %s522_s15, %s522_s15, %s523_s16  }
 0x214   :  { %512 = dma.done.wait [#allocation4], 256  }
 0x215   :  { %513 = vsyncadd [#allocation4], 4294967040 }
 0x216   :  { %313 = vsyncpa [#allocation3], 1 }
 0x217   :  { %314 = vsyncpa [#allocation6], 1 }
 0x218   :  { %315 = vsyncpa [#allocation4], 1 }

// kernel: tpu_custom_call.1
= control target key start
LH: loop header
LB: loop body
LE: loop exit
PB: predicated region body
PF: predicated region fallthrough
CT: control target
= control target key end

     0   :  { %10 = vsyncpa [#allocation3], 0  ;;  %s624_s0 = inlined_call_operand.hbm [shape: bf16[16,128], index: 0, kind: input, shape index: {}]   ;;  %s625_s1 = inlined_call_operand.hbm [shape: bf16[128,128], index: 1, kind: input, shape index: {}]   ;;  %s626_s2 = inlined_call_operand.vmem [shape: f32[1,128], index: 2, kind: input, shape index: {}]   ;;  %s627_s3 = inlined_call_operand.hbm [shape: bf16[128,128], index: 3, kind: input, shape index: {}]   ;;  %s628_s4 = inlined_call_operand.vmem [shape: f32[1,128], index: 4, kind: input, shape index: {}]   ;;  %s629_s5 = inlined_call_operand.hbm [shape: f32[16,128], index: 5, kind: output, shape index: {}]  }
   0x1   :  { %11 = vsyncpa [#allocation6], 0 }
   0x2   :  { %12 = vsyncpa [#allocation4], 0  ;;  %s514_s18 = smov [#allocation5]   ;;  %s515_s20 = smov [#allocation2]  }
   0x3   :  { %s30_s19 = sshll.u32 %s514_s18, 4  ;;  %s18_s21 = sshll.u32 %s515_s20, 4  ;;  %s31_s19 = int_to_ptr.vmem [resolvable:$true] %s30_s19  ;;  %s554_s21 = int_to_ptr.vmem [resolvable:$true] %s18_s21 }
   0x4   :  { %s420_s24 = scalar_lea.hbm %s625_s1, 1024 }
   0x5   :  { %p421_p0 = scmp.ne.s32.totalorder %s625_s1, %s420_s24  ;;  %p424_p1 = scmp.lt.u32.totalorder %s420_s24, %s625_s1 }
   0x7   :  { %p426_p2 = pnand %p424_p1, %p421_p0 }
   0x9   :  { %429 = shalt.err (!%p426_p2)
}
   0xa   :  { %s430_s29 = scalar_lea.vmem %s31_s19, 1024  ;;  %p435_p4 = scmp.lt.s32.totalorder %s31_s19, %s31_s19 }
   0xb   :  { %p431_p3 = scmp.ne.s32.totalorder %s31_s19, %s430_s29  ;;  %p436_p5 = scmp.lt.s32.totalorder %s430_s29, %s430_s29 }
   0xd   :  { %p437_p6 = por %p436_p5, %p435_p4 }
   0xf   :  { %p438_p7 = pnand %p437_p6, %p431_p3 }
  0x11   :  { %441 = shalt.err (!%p438_p7)
}
  0x12   :  { %s516_s30 = smov 64   ;;  %s517_s6 = smov 4  }
  0x13   :  { %36 = dma.hbm_to_vmem [thread:$0]  %s625_s1, 1024, %s31_s19, [#allocation6], %s516_s30, %s516_s30, %s517_s6  }
  0x14   :  { %s442_s11 = scalar_lea.hbm %s624_s0, 128 }
  0x15   :  { %p443_p8 = scmp.ne.s32.totalorder %s624_s0, %s442_s11  ;;  %p446_p9 = scmp.lt.u32.totalorder %s442_s11, %s624_s0 }
  0x17   :  { %p448_p10 = pnand %p446_p9, %p443_p8 }
  0x19   :  { %451 = shalt.err (!%p448_p10)
}
  0x1a   :  { %s452_s16 = scalar_lea.vmem %s554_s21, 128  ;;  %p457_p12 = scmp.lt.s32.totalorder %s554_s21, %s554_s21 }
  0x1b   :  { %p453_p11 = scmp.ne.s32.totalorder %s554_s21, %s452_s16  ;;  %p458_p13 = scmp.lt.s32.totalorder %s452_s16, %s452_s16 }
  0x1d   :  { %p459_p0 = por %p458_p13, %p457_p12 }
  0x1f   :  { %p460_p1 = pnand %p459_p0, %p453_p11 }
  0x21   :  { %463 = shalt.err (!%p460_p1)
}
  0x22   :  { %24 = dma.hbm_to_vmem [thread:$0]  %s624_s0, 128, %s554_s21, [#allocation3], %s516_s30, %s516_s30, %s517_s6  }
  0x23   :  { %s518_s18 = smov [#allocation7]   ;;  %s464_s23 = scalar_lea.hbm %s627_s3, 1024 }
  0x24   :  { %s44_s19 = sshll.u32 %s518_s18, 4  ;;  %p465_p2 = scmp.ne.s32.totalorder %s627_s3, %s464_s23  ;;  %s45_s19 = int_to_ptr.vmem [resolvable:$true] %s44_s19 }
  0x25   :  { %p468_p3 = scmp.lt.u32.totalorder %s464_s23, %s627_s3 }
  0x27   :  { %p470_p4 = pnand %p468_p3, %p465_p2 }
  0x29   :  { %473 = shalt.err (!%p470_p4)
}
  0x2a   :  { %s474_s28 = scalar_lea.vmem %s45_s19, 1024  ;;  %p479_p6 = scmp.lt.s32.totalorder %s45_s19, %s45_s19 }
  0x2b   :  { %p475_p5 = scmp.ne.s32.totalorder %s45_s19, %s474_s28  ;;  %p480_p7 = scmp.lt.s32.totalorder %s474_s28, %s474_s28 }
  0x2d   :  { %p481_p8 = por %p480_p7, %p479_p6 }
  0x2f   :  { %p482_p9 = pnand %p481_p8, %p475_p5 }
  0x31   :  { %485 = shalt.err (!%p482_p9)
}
  0x32   :  { %50 = dma.hbm_to_vmem [thread:$0]  %s627_s3, 1024, %s45_s19, [#allocation6], %s516_s30, %s516_s30, %s517_s6  }
  0x33   :  { %508 = dma.done.wait [#allocation3], 128  }
  0x34   :  { %509 = vsyncadd [#allocation3], 4294967168 }
  0x35   :  { %510 = dma.done.wait [#allocation6], 2048  }
  0x36   :  { %511 = vsyncadd [#allocation6], 4294965248  ;;  %v519_v0 = vmov 0.0   ;;  %vm520_vm0 = vmmov 0   ;;  %v403_v1 = vld [vmem:[#allocation5] sm:$0xff]   ;;  %v404_v2 = vld [vmem:[#allocation5 + $0x8] sm:$0xff]  }
  0x37   :  { %353 = vmatprep.subr.bf16.mxu0 %v519_v0  ;;  %369 = vmatprep.mubr.msk.bf16.mxu0 %vm520_vm0, %v519_v0  ;;  %v405_v3 = vld [vmem:[#allocation5 + $0x10] sm:$0xff]   ;;  %v412_v4 = vld [vmem:[#allocation7] sm:$0xff]   ;;  %v406_v5 = vld [vmem:[#allocation5 + $0x18] sm:$0xff]   ;;  %s521_s7 = smov [#allocation8]  }
  0x38   :  { %373 = vmatprep.subr.bf16.mxu1 %v519_v0  ;;  %389 = vmatprep.mubr.msk.bf16.mxu1 %vm520_vm0, %v519_v0  ;;  %v413_v6 = vld [vmem:[#allocation7 + $0x8] sm:$0xff]   ;;  %v407_v7 = vld [vmem:[#allocation5 + $0x20] sm:$0xff]   ;;  %v414_v8 = vld [vmem:[#allocation7 + $0x10] sm:$0xff]   ;;  %s303_s8 = sshll.u32 %s521_s7, 4  ;;  %s304_s8 = int_to_ptr.vmem [resolvable:$true] %s303_s8 }
  0x39   :  { %354 = vmatpush3.bf16.msra.mxu0 %v403_v1  ;;  %374 = vmatpush3.bf16.msra.mxu1 %v412_v4  ;;  %v408_v9 = vld [vmem:[#allocation5 + $0x28] sm:$0xff]   ;;  %v415_v10 = vld [vmem:[#allocation7 + $0x18] sm:$0xff]   ;;  %v409_v11 = vld [vmem:[#allocation5 + $0x30] sm:$0xff]   ;;  %p491_p11 = scmp.lt.s32.totalorder %s304_s8, %s304_s8 }
  0x3a   :  { %355 = vmatprep.subr.bf16.mxu0 %v519_v0  ;;  %375 = vmatprep.subr.bf16.mxu1 %v519_v0  ;;  %v416_v12 = vld [vmem:[#allocation7 + $0x20] sm:$0xff]   ;;  %v410_v13 = vld [vmem:[#allocation5 + $0x38] sm:$0xff]   ;;  %v417_v14 = vld [vmem:[#allocation7 + $0x28] sm:$0xff]  }
  0x3b   :  { %v411_v15 = vld [vmem:[#allocation2] sm:$0xff]   ;;  %v418_v16 = vld [vmem:[#allocation7 + $0x30] sm:$0xff]  }
  0x3c   :  { %v419_v17 = vld [vmem:[#allocation7 + $0x38] sm:$0xff]  }
  0x3d   :  { %356 = vmatpush3.bf16.msra.mxu0 %v404_v2  ;;  %376 = vmatpush3.bf16.msra.mxu1 %v413_v6  ;;  %v316_v18 = vld [vmem:[%s626_s2] ss:$0 sm:$0xff]  ;;  %s486_s2 = scalar_lea.vmem %s304_s8, 256 }
  0x3e   :  { %357 = vmatprep.subr.bf16.mxu0 %v519_v0  ;;  %377 = vmatprep.subr.bf16.mxu1 %v519_v0  ;;  %v326_v26 = vld [vmem:[%s628_s4] ss:$0 sm:$0xff]  ;;  %p487_p10 = scmp.ne.s32.totalorder %s304_s8, %s486_s2  ;;  %p492_p12 = scmp.lt.s32.totalorder %s486_s2, %s486_s2 }
  0x40   :  { %p493_p13 = por %p492_p12, %p491_p11 }
  0x41   :  { %358 = vmatpush3.bf16.msra.mxu0 %v405_v3  ;;  %378 = vmatpush3.bf16.msra.mxu1 %v414_v8 }
  0x42   :  { %359 = vmatprep.subr.bf16.mxu0 %v519_v0  ;;  %379 = vmatprep.subr.bf16.mxu1 %v519_v0  ;;  %p494_p0 = pnand %p493_p13, %p487_p10 }
  0x45   :  { %360 = vmatpush3.bf16.msra.mxu0 %v406_v5  ;;  %380 = vmatpush3.bf16.msra.mxu1 %v415_v10 }
  0x46   :  { %361 = vmatprep.subr.bf16.mxu0 %v519_v0  ;;  %381 = vmatprep.subr.bf16.mxu1 %v519_v0 }
  0x49   :  { %362 = vmatpush3.bf16.msra.mxu0 %v407_v7  ;;  %382 = vmatpush3.bf16.msra.mxu1 %v416_v12 }
  0x4a   :  { %363 = vmatprep.subr.bf16.mxu0 %v519_v0  ;;  %383 = vmatprep.subr.bf16.mxu1 %v519_v0 }
  0x4d   :  { %364 = vmatpush3.bf16.msra.mxu0 %v408_v9  ;;  %384 = vmatpush3.bf16.msra.mxu1 %v417_v14 }
  0x4e   :  { %365 = vmatprep.subr.bf16.mxu0 %v519_v0  ;;  %385 = vmatprep.subr.bf16.mxu1 %v519_v0 }
  0x51   :  { %366 = vmatpush3.bf16.msra.mxu0 %v409_v11  ;;  %386 = vmatpush3.bf16.msra.mxu1 %v418_v16 }
  0x52   :  { %367 = vmatprep.subr.bf16.mxu0 %v519_v0  ;;  %387 = vmatprep.subr.bf16.mxu1 %v519_v0 }
  0x55   :  { %368 = vmatpush3.bf16.msra.mxu0 %v410_v13  ;;  %388 = vmatpush3.bf16.msra.mxu1 %v419_v17 }
  0x58   :  { %370 = vmatmul.mubr.bf16.vlgmr.msra.gmra.mrb[0].mxu0 %v411_v15 }
 0x12b   :  { %v176_v19 = vpop.f32.mrb[0].mxu0 }
 0x12c   :  { %v371_v20 = vpop.f32.mrb[1].mxu0  ;;  %v177_v22 = vadd.f32 %v316_v18, %v176_v19 }
 0x12d   :  { %v179_v21 = vpop.f32.mrb[2].mxu0 }
 0x12e   :  { %v180_v23 = vadd.f32 %v316_v18, %v179_v21  ;;  %v372_v24 = vpop.f32.mrb[3].mxu0 }
 0x130   :  { %v183_v25 = vpack.c.bf16 %v180_v23, %v177_v22 }
 0x132   :  { %390 = vmatmul.mubr.bf16.vlgmr.msra.gmra.mrb[0].mxu1 %v183_v25 }
 0x205   :  { %v289_v27 = vpop.f32.mrb[0].mxu1 }
 0x206   :  { %v290_v28 = vadd.f32 %v326_v26, %v289_v27  ;;  %v391_v29 = vpop.f32.mrb[1].mxu1 }
 0x207   :  { %v292_v30 = vpop.f32.mrb[2].mxu1 }
 0x208   :  { %296 = vst [vmem:[#allocation8] sm:$0xff] %v290_v28  ;;  %v293_v31 = vadd.f32 %v326_v26, %v292_v30  ;;  %v392_v32 = vpop.f32.mrb[3].mxu1 }
 0x20a   :  { %297 = vst [vmem:[#allocation8 + $0x8] sm:$0xff] %v293_v31 }
 0x20b   :  { %497 = shalt.err (!%p494_p0)
}
 0x20c   :  { %s498_s10 = scalar_lea.hbm %s629_s5, 256 }
 0x20d   :  { %p499_p1 = scmp.ne.s32.totalorder %s629_s5, %s498_s10  ;;  %p502_p2 = scmp.lt.u32.totalorder %s498_s10, %s629_s5 }
 0x20f   :  { %p504_p3 = pnand %p502_p2, %p499_p1 }
 0x211   :  { %507 = shalt.err (!%p504_p3)
}
 0x212   :  { %s522_s15 = smov 128   ;;  %s523_s16 = smov 8  }
 0x213   :  { %309 = dma.vmem_to_hbm [thread:$0]  %s304_s8, 256, %s629_s5, [#allocation4], %s522_s15, %s522_s15, %s523_s16  }
 0x214   :  { %512 = dma.done.wait [#allocation4], 256  }
 0x215   :  { %513 = vsyncadd [#allocation4], 4294967040 }
 0x216   :  { %313 = vsyncpa [#allocation3], 1 }
 0x217   :  { %314 = vsyncpa [#allocation6], 1 }
 0x218   :  { %315 = vsyncpa [#allocation4], 1 }

</bundles_post_ra>
